<compile_context>
chip_gen: v5e
topology: v5e:2x2
jax: 0.10.0
libtpu: 0.0.40
codegen_flags: <defaults>
</compile_context>

<pallas_src>
import functools
import math

import jax
import jax.numpy as jnp
from jax.experimental import pallas as pl
from jax.experimental.pallas import tpu as pltpu


_LANE = 128      # weight matrices padded to a multiple of this (full MXU tiles)
_SUBLANE = 8     # row-tile granularity


def _round_up(x, m):
    return (x + m - 1) // m * m


def _cdiv(a, b):
    return (a + b - 1) // b


def _chip_config():
    """Best-effort chip query; conservative fallbacks if anything is unavailable."""
    kind = ""
    try:
        kind = jax.devices()[0].device_kind.lower()
    except Exception:
        pass
    vmem_cap = None
    try:
        vmem_cap = int(pltpu.get_tpu_info().vmem_capacity_bytes)
    except Exception:
        vmem_cap = None
    if not vmem_cap or vmem_cap <= 0:
        vmem_cap = (64 << 20) if "v7" in kind else (128 << 20)
    if "v7" in kind:                       # v7x: 64 MiB per TensorCore, never assume more
        vmem_cap = min(vmem_cap, 64 << 20)
    old_gen = any(t in kind for t in ("v2", "v3", "v4", "v5"))
    return {
        "vmem_capacity": vmem_cap,
        "has_bf16_vpu": not old_gen,       # bf16 VALUs on v6e / v7x only
        "max_tm": 512 if old_gen else 1024,  # smaller tiles where the 128x128 MXU binds first
        "num_cores": 2 if "v7" in kind else 1,
    }


def _compass_kernel(s_ref, c_ref, w1s_ref, w1c_ref, b1_ref, w2t_ref, b2_ref,
                    w3t_ref, b3_ref, o_ref, *, d_valid):
    """One (TM, 1) tile of sin/cos features -> one (TM, D) output tile."""
    vdt = b1_ref.dtype            # VPU / epilogue dtype (bf16 on v6e/v7x, f32 on v5e)
    mdt = w2t_ref.dtype           # MXU input dtype
    zero = jnp.zeros((), vdt)

    # linear1 (in_features = 2): two lane-broadcast FMAs + bias on the VPU.
    h = s_ref[...] * w1s_ref[...] + c_ref[...] * w1c_ref[...] + b1_ref[...]   # (TM, Dp)
    h = jnp.maximum(h, zero)

    # linear2 + ReLU: MXU with f32 accumulation, epilogue in the VPU dtype.
    h = jnp.dot(h.astype(mdt), w2t_ref[...], preferred_element_type=jnp.float32)
    h = jnp.maximum(h.astype(vdt) + b2_ref[...], zero)

    # linear3: f32 accumulation; final bias add kept in f32 for output accuracy.
    out = jnp.dot(h.astype(mdt), w3t_ref[...],
                  preferred_element_type=jnp.float32) + b3_ref[...]
    if d_valid != out.shape[1]:
        out = out[:, :d_valid]
    o_ref[...] = out.astype(o_ref.dtype)


def _pick_block_rows(n_rows, d, d_pad, weight_bytes, vbytes, cfg, block_rows=None):
    """Row-tile size: multiple of 8, fits the per-generation VMEM activation budget."""
    n_pad8 = _round_up(max(n_rows, 1), _SUBLANE)
    if block_rows is not None:
        return max(_SUBLANE, min(_round_up(int(block_rows), _SUBLANE), n_pad8))

    # Budget after resident weights (conservatively assume they are double-buffered).
    budget = int(0.7 * cfg["vmem_capacity"]) - 2 * weight_bytes
    budget = max(budget, 2 << 20)
    per_row = (2 * 2 * vbytes          # s, c inputs, double-buffered (TM, 1)
               + 2 * d * 4             # output tile, double-buffered, f32, D lanes
               + 4 * d_pad * 4)        # in-kernel temps (h, casts, accumulators) headroom
    tm = cfg["max_tm"]
    while tm > _SUBLANE and tm * per_row > budget:
        tm //= 2

    # Keep >= ~4 row tiles so megacore has something to split and the pipeline overlaps.
    target_tiles = max(4, 2 * cfg["num_cores"])
    tm = min(tm, max(_SUBLANE, _round_up(_cdiv(max(n_rows, 1), target_tiles), _SUBLANE)))
    return max(_SUBLANE, min(tm, n_pad8))


def compass_encoder_forward(x, params, *, matmul_dtype=jnp.bfloat16,
                            vpu_dtype=None, block_rows=None,
                            out_dtype=jnp.float32):
    """x: (B, S) float angles. Returns (B, S, D) out_dtype (default float32)."""
    cfg = _chip_config()
    if vpu_dtype is None:
        vpu_dtype = jnp.bfloat16 if cfg["has_bf16_vpu"] else jnp.float32
    vdt = jnp.dtype(vpu_dtype)
    mdt = jnp.dtype(matmul_dtype)

    w1, b1, w2, b2, w3, b3 = (params["w1"], params["b1"], params["w2"],
                              params["b2"], params["w3"], params["b3"])
    D = w1.shape[0]
    lead_shape = x.shape
    N = int(x.size)

    Dp = _round_up(D, _LANE)
    vbytes, mbytes = vdt.itemsize, mdt.itemsize
    # Resident weights: w1 sin/cos rows + b1 + b2 (vdt), b3 (f32), w2^T + w3^T (mdt).
    weight_bytes = 4 * Dp * vbytes + Dp * 4 + 2 * Dp * Dp * mbytes

    TM = _pick_block_rows(N, D, Dp, weight_bytes, vbytes, cfg, block_rows)
    Np = _round_up(N, TM)

    # Lane-dense sin/cos in the wrapper (XLA runs it at full 128-lane occupancy).
    two_pi = jnp.float32(2.0 * math.pi)
    x_flat = x.reshape(-1).astype(jnp.float32)
    s = jnp.pad(jnp.sin(two_pi * x_flat), (0, Np - N)).astype(vdt).reshape(Np, 1)
    c = jnp.pad(jnp.cos(two_pi * x_flat), (0, Np - N)).astype(vdt).reshape(Np, 1)

    def row_vec(v, dtype):
        return jnp.pad(v.astype(jnp.float32), (0, Dp - D)).astype(dtype).reshape(1, Dp)

    # Zero-padded weights: padded rows/cols contribute exact zeros, real columns unchanged.
    w1s = row_vec(w1[:, 0], vdt)                      # (1, Dp)
    w1c = row_vec(w1[:, 1], vdt)                      # (1, Dp)
    b1r = row_vec(b1, vdt)
    b2r = row_vec(b2, vdt)
    b3r = row_vec(b3, jnp.float32)
    pad2 = ((0, Dp - D), (0, Dp - D))
    w2t = jnp.pad(w2.T.astype(jnp.float32), pad2).astype(mdt)   # (Dp, Dp)
    w3t = jnp.pad(w3.T.astype(jnp.float32), pad2).astype(mdt)   # (Dp, Dp)

    # VMEM estimate (weights conservatively double-buffered) and capped limit (<~80% cap).
    act_bytes = 2 * (2 * TM * vbytes) + 2 * TM * D * 4 + 4 * TM * Dp * 4
    vmem_est = 2 * weight_bytes + act_bytes
    vmem_limit = int(min(int(0.8 * cfg["vmem_capacity"]),
                         max(32 << 20, int(1.5 * vmem_est))))

    grid = (Np // TM,)
    flops = int(2 * N * 2 * D + 2 * (2 * N * Dp * Dp))
    bytes_accessed = int(2 * Np * vbytes + weight_bytes + Np * D * 4)

    kernel = functools.partial(_compass_kernel, d_valid=D)

    def call(single_buffer_weights):
        def resident(shape):
            # Grid-invariant inputs: constant index_map; single-buffer when supported.
            if single_buffer_weights:
                return pl.BlockSpec(shape, lambda i: (0, 0),
                                    pipeline_mode=pl.Buffered(1))
            return pl.BlockSpec(shape, lambda i: (0, 0))

        return pl.pallas_call(
            kernel,
            out_shape=jax.ShapeDtypeStruct((Np, D), out_dtype),
            grid=grid,
            in_specs=[
                pl.BlockSpec((TM, 1), lambda i: (i, 0)),      # sin(2*pi*x), row-tiled
                pl.BlockSpec((TM, 1), lambda i: (i, 0)),      # cos(2*pi*x), row-tiled
                resident((1, Dp)),                            # w1 sin-column
                resident((1, Dp)),                            # w1 cos-column
                resident((1, Dp)),                            # b1
                resident((Dp, Dp)),                           # w2^T
                resident((1, Dp)),                            # b2
                resident((Dp, Dp)),                           # w3^T
                resident((1, Dp)),                            # b3 (f32)
            ],
            out_specs=pl.BlockSpec((TM, D), lambda i: (i, 0)),  # only D valid lanes written
            compiler_params=pltpu.CompilerParams(
                dimension_semantics=("parallel",),            # shard row tiles across TCs
                vmem_limit_bytes=vmem_limit),
            cost_estimate=pl.CostEstimate(
                flops=flops, transcendentals=0,
                bytes_accessed=bytes_accessed),
        )(s, c, w1s, w1c, b1r, w2t, b2r, w3t, b3r)

    if hasattr(pl, "Buffered"):
        try:
            out = call(True)
        except Exception:
            out = call(False)   # fallback: default double-buffered resident weights
    else:
        out = call(False)

    if Np > N:
        out = out[:N]
    return out.reshape(*lead_shape, D)


def init_params(key, output_dim):
    """Deterministic parameter init mirroring nn.Linear shapes."""
    k1, k2, k3, k4, k5, k6 = jax.random.split(key, 6)
    D = output_dim

    def lin_init(kw, kb, fan_in, fan_out):
        bound = 1.0 / jnp.sqrt(fan_in)
        w = jax.random.uniform(kw, (fan_out, fan_in), jnp.float32, -bound, bound)
        b = jax.random.uniform(kb, (fan_out,), jnp.float32, -bound, bound)
        return w, b

    w1, b1 = lin_init(k1, k2, 2, D)     # linear1: (D, 2), (D,)
    w2, b2 = lin_init(k3, k4, D, D)     # linear2: (D, D), (D,)
    w3, b3 = lin_init(k5, k6, D, D)     # linear3: (D, D), (D,)
    return {"w1": w1, "b1": b1, "w2": w2, "b2": b2, "w3": w3, "b3": b3}


def _reference(x, params, *, vpu_dtype, matmul_dtype):
    """Pure-JAX reference mirroring the kernel's dtype chain (PyTorch op order)."""
    vdt, mdt = jnp.dtype(vpu_dtype), jnp.dtype(matmul_dtype)
    two_pi = jnp.float32(2.0 * math.pi)
    s = jnp.sin(two_pi * x.astype(jnp.float32)).astype(vdt)[..., None]
    c = jnp.cos(two_pi * x.astype(jnp.float32)).astype(vdt)[..., None]
    w1 = params["w1"].astype(vdt)                          # (D, 2)
    h = s * w1[:, 0] + c * w1[:, 1] + params["b1"].astype(vdt)
    h = jnp.maximum(h, jnp.zeros((), vdt))
    h = jnp.dot(h.astype(mdt), params["w2"].T.astype(mdt),
                preferred_element_type=jnp.float32)
    h = jnp.maximum(h.astype(vdt) + params["b2"].astype(vdt), jnp.zeros((), vdt))
    out = jnp.dot(h.astype(mdt), params["w3"].T.astype(mdt),
                  preferred_element_type=jnp.float32) + params["b3"]
    return out


if __name__ == "__main__":
    key = jax.random.PRNGKey(0)
    kx, kp, kx2 = jax.random.split(key, 3)

    cfg = _chip_config()
    vdt = jnp.bfloat16 if cfg["has_bf16_vpu"] else jnp.float32
    tol = 5e-2 if vdt == jnp.bfloat16 else 1e-3

    # Small config consistent with the module: batch=2, seq=8, output_dim=32.
    B, S, D = 2, 8, 32
    x = jax.random.uniform(kx, (B, S), jnp.float32)     # angles in [0, 1)
    params = init_params(kp, D)

    out = jax.block_until_ready(compass_encoder_forward(x, params))
    ref = _reference(x, params, vpu_dtype=vdt, matmul_dtype=jnp.bfloat16)
    assert out.shape == (B, S, D)
    assert jnp.allclose(out, ref, atol=tol, rtol=tol), "mismatch (single-config case)"

    # Exercise the multi-tile path: explicit row tiling, N-remainder padding, D < 128.
    B2, S2 = 3, 50
    x2 = jax.random.uniform(kx2, (B2, S2), jnp.float32)
    out2 = jax.block_until_ready(
        compass_encoder_forward(x2, params, block_rows=64))
    ref2 = _reference(x2, params, vpu_dtype=vdt, matmul_dtype=jnp.bfloat16)
    assert out2.shape == (B2, S2, D)
    assert jnp.allclose(out2, ref2, atol=tol, rtol=tol), "mismatch (tiled case)"

    print("KERNEL_OK")
</pallas_src>

<mosaic_0001>
module attributes {stable_mosaic.version = 11 : i64} {
  func.func @_compass_kernel(%arg0: i32, %arg1: memref<8x1xbf16, #tpu.memory_space<vmem>>, %arg2: memref<8x1xbf16, #tpu.memory_space<vmem>>, %arg3: memref<1x128xbf16, #tpu.memory_space<vmem>>, %arg4: memref<1x128xbf16, #tpu.memory_space<vmem>>, %arg5: memref<1x128xbf16, #tpu.memory_space<vmem>>, %arg6: memref<128x128xbf16, #tpu.memory_space<vmem>>, %arg7: memref<1x128xbf16, #tpu.memory_space<vmem>>, %arg8: memref<128x128xbf16, #tpu.memory_space<vmem>>, %arg9: memref<1x128xf32, #tpu.memory_space<vmem>>, %arg10: memref<8x32xf32, #tpu.memory_space<vmem>>) attributes {dimension_semantics = [#tpu.dimension_semantics<parallel>], iteration_bounds = array<i64: 2>, scalar_prefetch = 0 : i64, scratch_operands = 0 : i64, tpu.core_type = #tpu.core_type<tc>, window_params = [{transform_indices = @transform_0, window_bounds = array<i64: 8, 1>}, {transform_indices = @transform_1, window_bounds = array<i64: 8, 1>}, {pipeline_mode = #tpu.pipeline_mode<synchronous>, transform_indices = @transform_2, window_bounds = array<i64: 1, 128>}, {pipeline_mode = #tpu.pipeline_mode<synchronous>, transform_indices = @transform_3, window_bounds = array<i64: 1, 128>}, {pipeline_mode = #tpu.pipeline_mode<synchronous>, transform_indices = @transform_4, window_bounds = array<i64: 1, 128>}, {pipeline_mode = #tpu.pipeline_mode<synchronous>, transform_indices = @transform_5, window_bounds = array<i64: 128, 128>}, {pipeline_mode = #tpu.pipeline_mode<synchronous>, transform_indices = @transform_6, window_bounds = array<i64: 1, 128>}, {pipeline_mode = #tpu.pipeline_mode<synchronous>, transform_indices = @transform_7, window_bounds = array<i64: 128, 128>}, {pipeline_mode = #tpu.pipeline_mode<synchronous>, transform_indices = @transform_8, window_bounds = array<i64: 1, 128>}, {transform_indices = @transform_9, window_bounds = array<i64: 8, 32>}]} {
    %c0 = arith.constant 0 : index
    %c0_0 = arith.constant 0 : index
    %0 = vector.load %arg1[%c0, %c0_0] : memref<8x1xbf16, #tpu.memory_space<vmem>>, vector<8x1xbf16>
    %c0_1 = arith.constant 0 : index
    %c0_2 = arith.constant 0 : index
    %1 = vector.load %arg3[%c0_1, %c0_2] : memref<1x128xbf16, #tpu.memory_space<vmem>>, vector<1x128xbf16>
    %2 = vector.broadcast %0 : vector<8x1xbf16> to vector<8x128xbf16>
    %3 = vector.broadcast %1 : vector<1x128xbf16> to vector<8x128xbf16>
    %4 = arith.mulf %2, %3 : vector<8x128xbf16>
    %c0_3 = arith.constant 0 : index
    %c0_4 = arith.constant 0 : index
    %5 = vector.load %arg2[%c0_3, %c0_4] : memref<8x1xbf16, #tpu.memory_space<vmem>>, vector<8x1xbf16>
    %c0_5 = arith.constant 0 : index
    %c0_6 = arith.constant 0 : index
    %6 = vector.load %arg4[%c0_5, %c0_6] : memref<1x128xbf16, #tpu.memory_space<vmem>>, vector<1x128xbf16>
    %7 = vector.broadcast %5 : vector<8x1xbf16> to vector<8x128xbf16>
    %8 = vector.broadcast %6 : vector<1x128xbf16> to vector<8x128xbf16>
    %9 = arith.mulf %7, %8 : vector<8x128xbf16>
    %10 = arith.addf %4, %9 : vector<8x128xbf16>
    %c0_7 = arith.constant 0 : index
    %c0_8 = arith.constant 0 : index
    %11 = vector.load %arg5[%c0_7, %c0_8] : memref<1x128xbf16, #tpu.memory_space<vmem>>, vector<1x128xbf16>
    %12 = vector.broadcast %11 : vector<1x128xbf16> to vector<8x128xbf16>
    %13 = arith.addf %10, %12 : vector<8x128xbf16>
    %cst = arith.constant 0.000000e+00 : bf16
    %14 = vector.broadcast %cst : bf16 to vector<8x128xbf16>
    %15 = arith.maximumf %13, %14 : vector<8x128xbf16>
    %c0_9 = arith.constant 0 : index
    %c0_10 = arith.constant 0 : index
    %16 = vector.load %arg6[%c0_9, %c0_10] : memref<128x128xbf16, #tpu.memory_space<vmem>>, vector<128x128xbf16>
    %cst_11 = arith.constant dense<0.000000e+00> : vector<8x128xf32>
    %17 = tpu.matmul %15, %16, %cst_11 {dimension_numbers = #tpu.dot_dimension_numbers<[1], [0], [0], [1], [0, 0, 1, 1], [], []>} : vector<8x128xbf16>, vector<128x128xbf16>, vector<8x128xf32> -> vector<8x128xf32>
    %18 = arith.truncf %17 : vector<8x128xf32> to vector<8x128xbf16>
    %c0_12 = arith.constant 0 : index
    %c0_13 = arith.constant 0 : index
    %19 = vector.load %arg7[%c0_12, %c0_13] : memref<1x128xbf16, #tpu.memory_space<vmem>>, vector<1x128xbf16>
    %20 = vector.broadcast %19 : vector<1x128xbf16> to vector<8x128xbf16>
    %21 = arith.addf %18, %20 : vector<8x128xbf16>
    %cst_14 = arith.constant 0.000000e+00 : bf16
    %22 = vector.broadcast %cst_14 : bf16 to vector<8x128xbf16>
    %23 = arith.maximumf %21, %22 : vector<8x128xbf16>
    %c0_15 = arith.constant 0 : index
    %c0_16 = arith.constant 0 : index
    %24 = vector.load %arg8[%c0_15, %c0_16] : memref<128x128xbf16, #tpu.memory_space<vmem>>, vector<128x128xbf16>
    %cst_17 = arith.constant dense<0.000000e+00> : vector<8x128xf32>
    %25 = tpu.matmul %23, %24, %cst_17 {dimension_numbers = #tpu.dot_dimension_numbers<[1], [0], [0], [1], [0, 0, 1, 1], [], []>} : vector<8x128xbf16>, vector<128x128xbf16>, vector<8x128xf32> -> vector<8x128xf32>
    %c0_18 = arith.constant 0 : index
    %c0_19 = arith.constant 0 : index
    %26 = vector.load %arg9[%c0_18, %c0_19] : memref<1x128xf32, #tpu.memory_space<vmem>>, vector<1x128xf32>
    %27 = vector.broadcast %26 : vector<1x128xf32> to vector<8x128xf32>
    %28 = arith.addf %25, %27 : vector<8x128xf32>
    %29 = vector.extract_strided_slice %28 {offsets = [0, 0], sizes = [8, 32], strides = [1, 1]} : vector<8x128xf32> to vector<8x32xf32>
    %c0_20 = arith.constant 0 : index
    %c0_21 = arith.constant 0 : index
    %30 = vector.load %arg10[%c0_20, %c0_21] : memref<8x32xf32, #tpu.memory_space<vmem>>, vector<8x32xf32>
    tpu.vector_store %arg10[%c0_20, %c0_21], %29 {strides = array<i32>} : memref<8x32xf32, #tpu.memory_space<vmem>>, vector<8x32xf32>,
    return
  }
  func.func @transform_0(%arg0: i32) -> (i32, i32) {
    %c0_i32 = arith.constant 0 : i32
    %c0_i32_0 = arith.constant 0 : i32
    return %arg0, %c0_i32 : i32, i32
  }
  func.func @transform_1(%arg0: i32) -> (i32, i32) {
    %c0_i32 = arith.constant 0 : i32
    %c0_i32_0 = arith.constant 0 : i32
    return %arg0, %c0_i32 : i32, i32
  }
  func.func @transform_2(%arg0: i32) -> (i32, i32) {
    %c0_i32 = arith.constant 0 : i32
    %c0_i32_0 = arith.constant 0 : i32
    %c0_i32_1 = arith.constant 0 : i32
    return %c0_i32, %c0_i32_0 : i32, i32
  }
  func.func @transform_3(%arg0: i32) -> (i32, i32) {
    %c0_i32 = arith.constant 0 : i32
    %c0_i32_0 = arith.constant 0 : i32
    %c0_i32_1 = arith.constant 0 : i32
    return %c0_i32, %c0_i32_0 : i32, i32
  }
  func.func @transform_4(%arg0: i32) -> (i32, i32) {
    %c0_i32 = arith.constant 0 : i32
    %c0_i32_0 = arith.constant 0 : i32
    %c0_i32_1 = arith.constant 0 : i32
    return %c0_i32, %c0_i32_0 : i32, i32
  }
  func.func @transform_5(%arg0: i32) -> (i32, i32) {
    %c0_i32 = arith.constant 0 : i32
    %c0_i32_0 = arith.constant 0 : i32
    %c0_i32_1 = arith.constant 0 : i32
    return %c0_i32, %c0_i32_0 : i32, i32
  }
  func.func @transform_6(%arg0: i32) -> (i32, i32) {
    %c0_i32 = arith.constant 0 : i32
    %c0_i32_0 = arith.constant 0 : i32
    %c0_i32_1 = arith.constant 0 : i32
    return %c0_i32, %c0_i32_0 : i32, i32
  }
  func.func @transform_7(%arg0: i32) -> (i32, i32) {
    %c0_i32 = arith.constant 0 : i32
    %c0_i32_0 = arith.constant 0 : i32
    %c0_i32_1 = arith.constant 0 : i32
    return %c0_i32, %c0_i32_0 : i32, i32
  }
  func.func @transform_8(%arg0: i32) -> (i32, i32) {
    %c0_i32 = arith.constant 0 : i32
    %c0_i32_0 = arith.constant 0 : i32
    %c0_i32_1 = arith.constant 0 : i32
    return %c0_i32, %c0_i32_0 : i32, i32
  }
  func.func @transform_9(%arg0: i32) -> (i32, i32) {
    %c0_i32 = arith.constant 0 : i32
    %c0_i32_0 = arith.constant 0 : i32
    return %arg0, %c0_i32 : i32, i32
  }
}

module attributes {stable_mosaic.version = 11 : i64} {
  func.func @_compass_kernel(%arg0: i32, %arg1: memref<8x1xbf16, #tpu.memory_space<vmem>>, %arg2: memref<8x1xbf16, #tpu.memory_space<vmem>>, %arg3: memref<1x128xbf16, #tpu.memory_space<vmem>>, %arg4: memref<1x128xbf16, #tpu.memory_space<vmem>>, %arg5: memref<1x128xbf16, #tpu.memory_space<vmem>>, %arg6: memref<128x128xbf16, #tpu.memory_space<vmem>>, %arg7: memref<1x128xbf16, #tpu.memory_space<vmem>>, %arg8: memref<128x128xbf16, #tpu.memory_space<vmem>>, %arg9: memref<1x128xf32, #tpu.memory_space<vmem>>, %arg10: memref<8x32xf32, #tpu.memory_space<vmem>>) attributes {dimension_semantics = [#tpu.dimension_semantics<parallel>], iteration_bounds = array<i64: 2>, scalar_prefetch = 0 : i64, scratch_operands = 0 : i64, tpu.core_type = #tpu.core_type<tc>, window_params = [{transform_indices = @transform_0, window_bounds = array<i64: 8, 1>}, {transform_indices = @transform_1, window_bounds = array<i64: 8, 1>}, {pipeline_mode = #tpu.pipeline_mode<synchronous>, transform_indices = @transform_2, window_bounds = array<i64: 1, 128>}, {pipeline_mode = #tpu.pipeline_mode<synchronous>, transform_indices = @transform_3, window_bounds = array<i64: 1, 128>}, {pipeline_mode = #tpu.pipeline_mode<synchronous>, transform_indices = @transform_4, window_bounds = array<i64: 1, 128>}, {pipeline_mode = #tpu.pipeline_mode<synchronous>, transform_indices = @transform_5, window_bounds = array<i64: 128, 128>}, {pipeline_mode = #tpu.pipeline_mode<synchronous>, transform_indices = @transform_6, window_bounds = array<i64: 1, 128>}, {pipeline_mode = #tpu.pipeline_mode<synchronous>, transform_indices = @transform_7, window_bounds = array<i64: 128, 128>}, {pipeline_mode = #tpu.pipeline_mode<synchronous>, transform_indices = @transform_8, window_bounds = array<i64: 1, 128>}, {transform_indices = @transform_9, window_bounds = array<i64: 8, 32>}]} {
    %c0 = arith.constant 0 : index
    %c0_0 = arith.constant 0 : index
    %0 = vector.load %arg1[%c0, %c0_0] : memref<8x1xbf16, #tpu.memory_space<vmem>>, vector<8x1xbf16>
    %c0_1 = arith.constant 0 : index
    %c0_2 = arith.constant 0 : index
    %1 = vector.load %arg3[%c0_1, %c0_2] : memref<1x128xbf16, #tpu.memory_space<vmem>>, vector<1x128xbf16>
    %2 = vector.broadcast %0 : vector<8x1xbf16> to vector<8x128xbf16>
    %3 = vector.broadcast %1 : vector<1x128xbf16> to vector<8x128xbf16>
    %4 = arith.mulf %2, %3 : vector<8x128xbf16>
    %c0_3 = arith.constant 0 : index
    %c0_4 = arith.constant 0 : index
    %5 = vector.load %arg2[%c0_3, %c0_4] : memref<8x1xbf16, #tpu.memory_space<vmem>>, vector<8x1xbf16>
    %c0_5 = arith.constant 0 : index
    %c0_6 = arith.constant 0 : index
    %6 = vector.load %arg4[%c0_5, %c0_6] : memref<1x128xbf16, #tpu.memory_space<vmem>>, vector<1x128xbf16>
    %7 = vector.broadcast %5 : vector<8x1xbf16> to vector<8x128xbf16>
    %8 = vector.broadcast %6 : vector<1x128xbf16> to vector<8x128xbf16>
    %9 = arith.mulf %7, %8 : vector<8x128xbf16>
    %10 = arith.addf %4, %9 : vector<8x128xbf16>
    %c0_7 = arith.constant 0 : index
    %c0_8 = arith.constant 0 : index
    %11 = vector.load %arg5[%c0_7, %c0_8] : memref<1x128xbf16, #tpu.memory_space<vmem>>, vector<1x128xbf16>
    %12 = vector.broadcast %11 : vector<1x128xbf16> to vector<8x128xbf16>
    %13 = arith.addf %10, %12 : vector<8x128xbf16>
    %cst = arith.constant 0.000000e+00 : bf16
    %14 = vector.broadcast %cst : bf16 to vector<8x128xbf16>
    %15 = arith.maximumf %13, %14 : vector<8x128xbf16>
    %c0_9 = arith.constant 0 : index
    %c0_10 = arith.constant 0 : index
    %16 = vector.load %arg6[%c0_9, %c0_10] : memref<128x128xbf16, #tpu.memory_space<vmem>>, vector<128x128xbf16>
    %cst_11 = arith.constant dense<0.000000e+00> : vector<8x128xf32>
    %17 = tpu.matmul %15, %16, %cst_11 {dimension_numbers = #tpu.dot_dimension_numbers<[1], [0], [0], [1], [0, 0, 1, 1], [], []>} : vector<8x128xbf16>, vector<128x128xbf16>, vector<8x128xf32> -> vector<8x128xf32>
    %18 = arith.truncf %17 : vector<8x128xf32> to vector<8x128xbf16>
    %c0_12 = arith.constant 0 : index
    %c0_13 = arith.constant 0 : index
    %19 = vector.load %arg7[%c0_12, %c0_13] : memref<1x128xbf16, #tpu.memory_space<vmem>>, vector<1x128xbf16>
    %20 = vector.broadcast %19 : vector<1x128xbf16> to vector<8x128xbf16>
    %21 = arith.addf %18, %20 : vector<8x128xbf16>
    %cst_14 = arith.constant 0.000000e+00 : bf16
    %22 = vector.broadcast %cst_14 : bf16 to vector<8x128xbf16>
    %23 = arith.maximumf %21, %22 : vector<8x128xbf16>
    %c0_15 = arith.constant 0 : index
    %c0_16 = arith.constant 0 : index
    %24 = vector.load %arg8[%c0_15, %c0_16] : memref<128x128xbf16, #tpu.memory_space<vmem>>, vector<128x128xbf16>
    %cst_17 = arith.constant dense<0.000000e+00> : vector<8x128xf32>
    %25 = tpu.matmul %23, %24, %cst_17 {dimension_numbers = #tpu.dot_dimension_numbers<[1], [0], [0], [1], [0, 0, 1, 1], [], []>} : vector<8x128xbf16>, vector<128x128xbf16>, vector<8x128xf32> -> vector<8x128xf32>
    %c0_18 = arith.constant 0 : index
    %c0_19 = arith.constant 0 : index
    %26 = vector.load %arg9[%c0_18, %c0_19] : memref<1x128xf32, #tpu.memory_space<vmem>>, vector<1x128xf32>
    %27 = vector.broadcast %26 : vector<1x128xf32> to vector<8x128xf32>
    %28 = arith.addf %25, %27 : vector<8x128xf32>
    %29 = vector.extract_strided_slice %28 {offsets = [0, 0], sizes = [8, 32], strides = [1, 1]} : vector<8x128xf32> to vector<8x32xf32>
    %c0_20 = arith.constant 0 : index
    %c0_21 = arith.constant 0 : index
    %30 = vector.load %arg10[%c0_20, %c0_21] : memref<8x32xf32, #tpu.memory_space<vmem>>, vector<8x32xf32>
    tpu.vector_store %arg10[%c0_20, %c0_21], %29 {strides = array<i32>} : memref<8x32xf32, #tpu.memory_space<vmem>>, vector<8x32xf32>,
    return
  }
  func.func @transform_0(%arg0: i32) -> (i32, i32) {
    %c0_i32 = arith.constant 0 : i32
    %c0_i32_0 = arith.constant 0 : i32
    return %arg0, %c0_i32 : i32, i32
  }
  func.func @transform_1(%arg0: i32) -> (i32, i32) {
    %c0_i32 = arith.constant 0 : i32
    %c0_i32_0 = arith.constant 0 : i32
    return %arg0, %c0_i32 : i32, i32
  }
  func.func @transform_2(%arg0: i32) -> (i32, i32) {
    %c0_i32 = arith.constant 0 : i32
    %c0_i32_0 = arith.constant 0 : i32
    %c0_i32_1 = arith.constant 0 : i32
    return %c0_i32, %c0_i32_0 : i32, i32
  }
  func.func @transform_3(%arg0: i32) -> (i32, i32) {
    %c0_i32 = arith.constant 0 : i32
    %c0_i32_0 = arith.constant 0 : i32
    %c0_i32_1 = arith.constant 0 : i32
    return %c0_i32, %c0_i32_0 : i32, i32
  }
  func.func @transform_4(%arg0: i32) -> (i32, i32) {
    %c0_i32 = arith.constant 0 : i32
    %c0_i32_0 = arith.constant 0 : i32
    %c0_i32_1 = arith.constant 0 : i32
    return %c0_i32, %c0_i32_0 : i32, i32
  }
  func.func @transform_5(%arg0: i32) -> (i32, i32) {
    %c0_i32 = arith.constant 0 : i32
    %c0_i32_0 = arith.constant 0 : i32
    %c0_i32_1 = arith.constant 0 : i32
    return %c0_i32, %c0_i32_0 : i32, i32
  }
  func.func @transform_6(%arg0: i32) -> (i32, i32) {
    %c0_i32 = arith.constant 0 : i32
    %c0_i32_0 = arith.constant 0 : i32
    %c0_i32_1 = arith.constant 0 : i32
    return %c0_i32, %c0_i32_0 : i32, i32
  }
  func.func @transform_7(%arg0: i32) -> (i32, i32) {
    %c0_i32 = arith.constant 0 : i32
    %c0_i32_0 = arith.constant 0 : i32
    %c0_i32_1 = arith.constant 0 : i32
    return %c0_i32, %c0_i32_0 : i32, i32
  }
  func.func @transform_8(%arg0: i32) -> (i32, i32) {
    %c0_i32 = arith.constant 0 : i32
    %c0_i32_0 = arith.constant 0 : i32
    %c0_i32_1 = arith.constant 0 : i32
    return %c0_i32, %c0_i32_0 : i32, i32
  }
  func.func @transform_9(%arg0: i32) -> (i32, i32) {
    %c0_i32 = arith.constant 0 : i32
    %c0_i32_0 = arith.constant 0 : i32
    return %arg0, %c0_i32 : i32, i32
  }
}

</mosaic_0001>

<bundles_post_ra>
// kernel: tpu_custom_call.1
= control target key start
LH: loop header
LB: loop body
LE: loop exit
PB: predicated region body
PF: predicated region fallthrough
CT: control target
= control target key end

     0   :  { %s1192_s0 = inlined_call_operand.vmem [shape: bf16[16,1], index: 0, kind: input, shape index: {}]   ;;  %s1193_s1 = inlined_call_operand.vmem [shape: bf16[16,1], index: 1, kind: input, shape index: {}]   ;;  %s1194_s2 = inlined_call_operand.vmem [shape: bf16[1,128], index: 2, kind: input, shape index: {}]   ;;  %s1195_s3 = inlined_call_operand.vmem [shape: bf16[1,128], index: 3, kind: input, shape index: {}]   ;;  %s1196_s4 = inlined_call_operand.vmem [shape: bf16[1,128], index: 4, kind: input, shape index: {}]   ;;  %s1197_s5 = inlined_call_operand.hbm [shape: bf16[128,128], index: 5, kind: input, shape index: {}]   ;;  %s1198_s6 = inlined_call_operand.vmem [shape: bf16[1,128], index: 6, kind: input, shape index: {}]   ;;  %s1199_s7 = inlined_call_operand.hbm [shape: bf16[128,128], index: 7, kind: input, shape index: {}]   ;;  %s1200_s8 = inlined_call_operand.vmem [shape: f32[1,128], index: 8, kind: input, shape index: {}]   ;;  %s1201_s9 = inlined_call_operand.hbm [shape: f32[16,32], index: 9, kind: output, shape index: {}]  }
   0x1   :  { %1202 = sst [smem:[#allocation11_spill]] %s1192_s0 }
   0x2   :  { %14 = vsyncpa [#allocation3], 0 }
   0x3   :  { %15 = vsyncpa [#allocation6], 0 }
   0x4   :  { %16 = vsyncpa [#allocation4], 0 }
   0x5   :  { %18 = vsyncpa [#allocation4 + $0x1], 0  ;;  %s1064_s30 = smov 0   ;;  %s1066_s10 = smov 0  }
   0x6   :  { %s1068_s11 = smov 0   ;;  %s1070_s12 = smov 0  }
   0x7 LB: > { %s1085_s13 = sadd.s32 4294967295, %s1006_s12   ;;  %s715_s14 = sadd.s32 4294967294, %s1006_s12   ;;  %s1006_s12 = sphi %s1070_s12, %s1210_s12   ;;  %s1002_s11 = sphi %s1068_s11, %s1209_s11   ;;  %s998_s10 = sphi %s1066_s10, %s1208_s10   ;;  %s994_s30 = sphi %s1064_s30, %s1207_s30  }
   0x8   : > { %s1089_s15 = sadd.s32 1, %s1006_s12   ;;  %s230_s16 = sadd.s32 1, %s1002_s11 }
   0x9   : > { %s227_s17 = ssub.s32 %s1006_s12, %s1089_s15  ;;  %p240_p0 = scmp.ne.s32.totalorder %s1002_s11, %s998_s10 }
   0xa   : > { %p228_p1 = scmp.eq.s32.totalorder %s227_s17, 0  ;;  %p241_p2 = scmp.eq.s32.totalorder %s1085_s13, 1 }
   0xb   : > { %p246_p3 = scmp.ne.s32.totalorder %s998_s10, %s994_s30  ;;  %p247_p4 = scmp.eq.s32.totalorder %s715_s14, 1 }
   0xc   : > { %s1100_s18 = scalar_select %p228_p1, %s1002_s11, %s230_s16  }
   0xd   : > { %p1102_p5 = por %p241_p2, %p240_p0  ;;  %p1106_p6 = por %p247_p4, %p246_p3 }
   0xe   : > { %p716_p7 = scmp.ge.s32.totalorder %s1006_s12, 1  ;;  %p254_p8 = scmp.lt.s32.totalorder %s1006_s12, 3 }
   0xf   : > { %p831_p9 = scmp.eq.s32.totalorder %s1085_s13, 0  ;;  %s274_s24 = sshll.u32 %s1197_s5, 4  ;;  %s275_s24 = int_to_ptr.hbm [resolvable:$true] %s274_s24 }
  0x10   : > { %p1113_p10 = pnand %p716_p7, %p254_p8  ;;  %s1008_s25 = smov [#allocation2]  }
  0x11   : > { %s276_s26 = sshll.u32 %s1008_s25, 4  ;;  %s291_s29 = sshll.u32 %s1199_s7, 4  ;;  %s277_s26 = int_to_ptr.vmem [resolvable:$true] %s276_s26  ;;  %s292_s29 = int_to_ptr.hbm [resolvable:$true] %s291_s29 }
  0x12   : > { %p820_p11 = pneg %p1113_p10  ;;  %s1009_s14 = smov 64  }
  0x13   : > { %s1010_s16 = smov 4   ;;  %s1011_s17 = smov [#allocation5]  }
  0x14   : > { %p821_p12 = pnand %p831_p9, %p820_p11  ;;  %s293_s22 = sshll.u32 %s1011_s17, 4  ;;  %s294_s22 = int_to_ptr.vmem [resolvable:$true] %s293_s22 }
  0x15   : > { %326 = sbr.rel (%p1113_p10) target bundleno = 452 (0x1c4), region = 56 }
  0x16   : > { %823 = dma.hbm_to_vmem [thread:$0]  (!%p821_p12), %s275_s24, 1024, %s277_s26, [#allocation3], %s1009_s14, %s1009_s14, %s1010_s16  }
  0x17   : > { %826 = dma.hbm_to_vmem [thread:$0]  (!%p821_p12), %s292_s29, 1024, %s294_s22, [#allocation6], %s1009_s14, %s1009_s14, %s1010_s16  }
  0x1a   : > { %981 = dma.done.wait (%p831_p9), [#allocation3], 1024  }
  0x1b   : > { %983 = vsyncadd (%p831_p9), [#allocation3], 4294966272 }
  0x1c   : > { %985 = dma.done.wait (%p831_p9), [#allocation6], 1024  }
  0x1d   : > { %987 = vsyncadd (%p831_p9), [#allocation6], 4294966272  ;;  %p371_p13 = scmp.lt.s32.totalorder %s1085_s13, 1  ;;  %v1012_v0 = vmov 0   ;;  %s1206_s0 = sld [smem:[#allocation11_spill]]  ;;  %v801_v2 = vld [vmem:[#allocation2 + $0x38] sm:$0xff] }
  0x1e   : > { %874 = vset.pattern.permute.xlu0 %v1012_v0  ;;  %497 = vmatpush.bf16.msra.mxu0 %v801_v2  ;;  %v800_v4 = vld [vmem:[#allocation2 + $0x30] sm:$0xff]  ;;  %v799_v5 = vld [vmem:[#allocation2 + $0x28] sm:$0xff]  ;;  %v798_v6 = vld [vmem:[#allocation2 + $0x20] sm:$0xff]  ;;  %v1013_v11 = vmov 839922192   ;;  %s791_s27 = sshll.u32 %s1085_s13, 3 }
  0x1f   : > { %s372_s23 = scalar_select %p371_p13, %s1085_s13, 1  ;;  %v797_v7 = vld [vmem:[#allocation2 + $0x18] sm:$0xff]  ;;  %v796_v8 = vld [vmem:[#allocation2 + $0x10] sm:$0xff]  ;;  %v795_v9 = vld [vmem:[#allocation2 + $0x8] sm:$0xff]  ;;  %v387_v12 = vunpack.c.l.s4 %v1013_v11  ;;  %vm604_vm0 = vcmask 261120  }
  0x20   : > { %v794_v10 = vld [vmem:[#allocation2] sm:$0xff]  ;;  %v809_v17 = vld [vmem:[#allocation5 + $0x38] sm:$0xff]  ;;  %v808_v22 = vld [vmem:[#allocation5 + $0x30] sm:$0xff]  ;;  %s617_s16 = scalar_lea.hbm %s1201_s9, %s791_s27 }
  0x21   : > { %s724_s21 = sshll.u32 %s372_s23, 2  ;;  %v380_v13 = vld [vmem:[%s1194_s2] sm:$0x1]  ;;  %v388_v14 = vunpack.c.0.s8 %v387_v12  ;;  %591 = vmatpush.bf16.msra.mxu1 %v809_v17  ;;  %v807_v26 = vld [vmem:[#allocation5 + $0x28] sm:$0xff]  ;;  %v805_v37 = vld [vmem:[#allocation5 + $0x18] sm:$0xff]  ;;  %s621_s24 = sshll.u32 %s617_s16, 4  ;;  %s622_s24 = int_to_ptr.hbm [resolvable:$true] %s621_s24 }
  0x22   : > { %s378_s29 = scalar_lea.vmem %s1193_s1, %s724_s21  ;;  %498 = vmatpush.bf16.msra.mxu0 %v800_v4  ;;  %v391_v15 = vpack.i.b16 %v380_v13, %v380_v13  ;;  %v399_v16 = vld [vmem:[%s1195_s3] sm:$0x1]  ;;  %v804_v49 = vld [vmem:[#allocation5 + $0x10] sm:$0xff]  ;;  %v803_v50 = vld [vmem:[#allocation5 + $0x8] sm:$0xff]  ;;  %s950_s25 = sshra.s32 %s622_s24, 4  ;;  %s951_s25 = int_to_ptr.hbm [resolvable:$true] %s950_s25 }
  0x23   : > { %s374_s26 = scalar_lea.vmem %s1206_s0, %s724_s21  ;;  %v398_v3 = vld [vmem:[%s378_s29] sm:$0xf]  ;;  %v410_v21 = vpack.i.b16 %v399_v16, %v399_v16  ;;  %s952_s0 = scalar_lea.hbm %s951_s25, 8 }
  0x24   : > { %v379_v1 = vld [vmem:[%s374_s26] sm:$0xf]  ;;  %v393_v19 = vperm.slane %v391_v15, 0  ;;  %s368_s26 = sand.u32 1, %s998_s10   ;;  %p953_p0 = scmp.ne.s32.totalorder %s951_s25, %s952_s0 }
  0x25   : > { %383 = vperm.xlu0 %874, %v379_v1   ;;  %v412_v25 = vperm.slane %v410_v21, 0  ;;  %592 = vmatpush.bf16.msra.mxu1 %v808_v22  ;;  %v806_v31 = vld [vmem:[#allocation5 + $0x20] sm:$0xff]  ;;  %s723_s28 = sshll.u32 %s368_s26, 3  ;;  %s607_s13 = scalar_lea.sflag [#allocation4], %s368_s26 }
  0x26   : > { %499 = vmatpush.bf16.msra.mxu0 %v799_v5  ;;  %v395_v23 = vunpack.c.l.bf16 %v393_v19  ;;  %v421_v32 = vld [vmem:[%s1196_s4] sm:$0x1]  ;;  %s370_s23 = scalar_lea.vmem [#allocation7], %s723_s28  ;;  %p954_p1 = pnand %p953_p0, %p1102_p5 }
  0x27   : > { %v414_v29 = vunpack.c.l.bf16 %v412_v25  ;;  %v423_v36 = vpack.i.b16 %v421_v32, %v421_v32  ;;  %v802_v51 = vld [vmem:[#allocation5] sm:$0xff]  ;;  %s619_s21 = sshll.u32 %s370_s23, 4  ;;  %s956_s28 = scalar_lea.hbm %s1201_s9, 16  ;;  %s620_s21 = int_to_ptr.vmem [resolvable:$true] %s619_s21 }
  0x28   : > { %v511_v52 = vld [vmem:[%s1198_s6] sm:$0x1]  ;;  %p955_p2 = pneg %p954_p1  ;;  %p957_p3 = scmp.lt.s32.totalorder %s951_s25, %s1201_s9 }
  0x29   : > { %593 = vmatpush.bf16.msra.mxu1 %v807_v26  ;;  %v425_v41 = vperm.slane %v423_v36, 0  ;;  %v513_v53 = vpack.i.b16 %v511_v52, %v511_v52  ;;  %v875_v63 = vld [vmem:[%s1200_s8] ss:$0 sm:$0xff]  ;;  %p958_p4 = scmp.lt.s32.totalorder %s956_s28, %s952_s0 }
  0x2a   : > { %500 = vmatpush.bf16.msra.mxu0 %v798_v6 }
  0x2b   : > { %v427_v44 = vunpack.c.l.bf16 %v425_v41  ;;  %v515_v54 = vperm.slane %v513_v53, 0  ;;  %p959_p7 = por %p958_p4, %p957_p3 }
  0x2d   : > { %402 = vperm.xlu0 %874, %v398_v3   ;;  %594 = vmatpush.bf16.msra.mxu1 %v806_v31  ;;  %v517_v57 = vunpack.c.l.bf16 %v515_v54  ;;  %p960_p8 = pnand %p959_p7, %p955_p2 }
  0x2e   : > { %501 = vmatpush.bf16.msra.mxu0 %v797_v7 }
  0x31   : > { %595 = vmatpush.bf16.msra.mxu1 %v805_v37 }
  0x32   : > { %502 = vmatpush.bf16.msra.mxu0 %v796_v8 }
  0x35   : > { %596 = vmatpush.bf16.msra.mxu1 %v804_v49 }
  0x36   : > { %503 = vmatpush.bf16.msra.mxu0 %v795_v9 }
  0x39   : > { %597 = vmatpush.bf16.msra.mxu1 %v803_v50 }
  0x3a   : > { %504 = vmatpush.bf16.msra.mxu0 %v794_v10 }
  0x3d   : > { %598 = vmatpush.bf16.msra.mxu1 %v802_v51 }
  0x97   : > { %v384_v18 = vpop.permute.xlu0 %383 }
  0x98   : > { %v389_v20 = vperm.slane %v384_v18, %v388_v14 }
  0x9a   : > { %v394_v24 = vunpack.c.l.bf16 %v389_v20 }
  0x9c   : > { %v396_v28 = vmul.f32 %v395_v23, %v394_v24 }
  0x9e   : > { %v397_v34 = vpack.c.bf16 %v396_v28, %v396_v28 }
  0x9f   : > { %v403_v27 = vpop.permute.xlu0 %402 }
  0xa0   : > { %v408_v30 = vperm.slane %v403_v27, %v388_v14  ;;  %v417_v39 = vunpack.c.l.bf16 %v397_v34 }
  0xa2   : > { %v413_v33 = vunpack.c.l.bf16 %v408_v30 }
  0xa4   : > { %v415_v35 = vmul.f32 %v414_v29, %v413_v33 }
  0xa6   : > { %v416_v38 = vpack.c.bf16 %v415_v35, %v415_v35 }
  0xa8   : > { %v418_v40 = vunpack.c.l.bf16 %v416_v38 }
  0xaa   : > { %v419_v42 = vadd.f32 %v418_v40, %v417_v39 }
  0xac   : > { %v420_v43 = vpack.c.bf16 %v419_v42, %v419_v42 }
  0xae   : > { %v426_v45 = vunpack.c.l.bf16 %v420_v43 }
  0xb0   : > { %v428_v46 = vadd.f32 %v427_v44, %v426_v45 }
  0xb2   : > { %v431_v47 = vmax.f32 %v428_v46, 0.0 }
  0xb4   : > { %v432_v48 = vpack.c.bf16 %v431_v47, %v431_v47 }
  0xb6   : > { %505 = vmatmul.bf16.vlgmr.msra.gmra.mxu0 %v432_v48 }
 0x133   : > { %v506_v55 = vpop.f32.mrf.mxu0 }
 0x134   : > { %v510_v56 = vpack.c.bf16 %v506_v55, %v506_v55 }
 0x136   : > { %v516_v58 = vunpack.c.l.bf16 %v510_v56 }
 0x138   : > { %v518_v59 = vadd.f32 %v517_v57, %v516_v58 }
 0x13a   : > { %v521_v60 = vmax.f32 %v518_v59, 0.0 }
 0x13b   : > { %v508_v61 = vpop.f32.mrf.mxu0 }
 0x13c   : > { %v522_v62 = vpack.c.bf16 %v521_v60, %v521_v60 }
 0x13e   : > { %599 = vmatmul.bf16.vlgmr.msra.gmra.mxu1 %v522_v62 }
 0x1bb   : > { %v600_v0 = vpop.f32.mrf.mxu1 }
 0x1bc   : > { %v601_v1 = vadd.f32 %v875_v63, %v600_v0 }
 0x1be   : > { %605 = vst.msk [vmem:[%s370_s23] sm:$0xff] %vm604_vm0, %v601_v1 }
 0x1bf   : > { %963 = shalt.err (!%p960_p8)
}
 0x1c0   : > { %818 = dma.vmem_to_hbm [thread:$0]  (%p1102_p5), %s620_s21, 128, %s622_s24, %s607_s13  }
 0x1c3   : > { %v602_v2 = vpop.f32.mrf.mxu1 }
 0x1c4 PF: > { %p835_p9 = scmp.ge.s32.totalorder %s1006_s12, 2  ;;  %s633_s26 = sand.u32 1, %s994_s30  }
 0x1c5   : > { %s634_s17 = scalar_lea.sflag [#allocation4], %s633_s26 }
 0x1c6   : > { %p828_p10 = pnand %p835_p9, %p1106_p6 }
 0x1c8   : > { %p829_p11 = pneg %p828_p10 }
 0x1ca   : > { %989 = dma.done.wait (%p829_p11), %s634_s17, 128  }
 0x1cb   : > { %991 = vsyncadd (%p829_p11), %s634_s17, 4294967168  ;;  %p21_p12 = scmp.ge.s32.totalorder %s1089_s15, 4   ;;  %s1207_s30 = smov %s998_s10 }
 0x1cc   : > { %s1208_s10 = smov %s1002_s11  ;;  %s1209_s11 = smov %s1100_s18 }
 0x1cd   : > { %s1210_s12 = smov %s1089_s15  ;;  %23 = sbr.rel (!%p21_p12) target bundleno = 7 (0x7), region = 103 }
 0x1d2   :  { %640 = vsyncpa [#allocation3], 1 }
 0x1d3   :  { %642 = vsyncpa [#allocation3 + $0x1], 1 }
 0x1d4   :  { %643 = vsyncpa [#allocation6], 1 }
 0x1d5   :  { %644 = vsyncpa [#allocation4], 1 }
 0x1d6   :  { %646 = vsyncpa [#allocation4 + $0x1], 1 }

// kernel: tpu_custom_call.1
= control target key start
LH: loop header
LB: loop body
LE: loop exit
PB: predicated region body
PF: predicated region fallthrough
CT: control target
= control target key end

     0   :  { %s1192_s0 = inlined_call_operand.vmem [shape: bf16[16,1], index: 0, kind: input, shape index: {}]   ;;  %s1193_s1 = inlined_call_operand.vmem [shape: bf16[16,1], index: 1, kind: input, shape index: {}]   ;;  %s1194_s2 = inlined_call_operand.vmem [shape: bf16[1,128], index: 2, kind: input, shape index: {}]   ;;  %s1195_s3 = inlined_call_operand.vmem [shape: bf16[1,128], index: 3, kind: input, shape index: {}]   ;;  %s1196_s4 = inlined_call_operand.vmem [shape: bf16[1,128], index: 4, kind: input, shape index: {}]   ;;  %s1197_s5 = inlined_call_operand.hbm [shape: bf16[128,128], index: 5, kind: input, shape index: {}]   ;;  %s1198_s6 = inlined_call_operand.vmem [shape: bf16[1,128], index: 6, kind: input, shape index: {}]   ;;  %s1199_s7 = inlined_call_operand.hbm [shape: bf16[128,128], index: 7, kind: input, shape index: {}]   ;;  %s1200_s8 = inlined_call_operand.vmem [shape: f32[1,128], index: 8, kind: input, shape index: {}]   ;;  %s1201_s9 = inlined_call_operand.hbm [shape: f32[16,32], index: 9, kind: output, shape index: {}]  }
   0x1   :  { %1202 = sst [smem:[#allocation11_spill]] %s1192_s0 }
   0x2   :  { %14 = vsyncpa [#allocation3], 0 }
   0x3   :  { %15 = vsyncpa [#allocation6], 0 }
   0x4   :  { %16 = vsyncpa [#allocation4], 0 }
   0x5   :  { %18 = vsyncpa [#allocation4 + $0x1], 0  ;;  %s1064_s30 = smov 0   ;;  %s1066_s10 = smov 0  }
   0x6   :  { %s1068_s11 = smov 0   ;;  %s1070_s12 = smov 0  }
   0x7 LB: > { %s1085_s13 = sadd.s32 4294967295, %s1006_s12   ;;  %s715_s14 = sadd.s32 4294967294, %s1006_s12   ;;  %s1006_s12 = sphi %s1070_s12, %s1210_s12   ;;  %s1002_s11 = sphi %s1068_s11, %s1209_s11   ;;  %s998_s10 = sphi %s1066_s10, %s1208_s10   ;;  %s994_s30 = sphi %s1064_s30, %s1207_s30  }
   0x8   : > { %s1089_s15 = sadd.s32 1, %s1006_s12   ;;  %s230_s16 = sadd.s32 1, %s1002_s11 }
   0x9   : > { %s227_s17 = ssub.s32 %s1006_s12, %s1089_s15  ;;  %p240_p0 = scmp.ne.s32.totalorder %s1002_s11, %s998_s10 }
   0xa   : > { %p228_p1 = scmp.eq.s32.totalorder %s227_s17, 0  ;;  %p241_p2 = scmp.eq.s32.totalorder %s1085_s13, 1 }
   0xb   : > { %p246_p3 = scmp.ne.s32.totalorder %s998_s10, %s994_s30  ;;  %p247_p4 = scmp.eq.s32.totalorder %s715_s14, 1 }
   0xc   : > { %s1100_s18 = scalar_select %p228_p1, %s1002_s11, %s230_s16  }
   0xd   : > { %p1102_p5 = por %p241_p2, %p240_p0  ;;  %p1106_p6 = por %p247_p4, %p246_p3 }
   0xe   : > { %p716_p7 = scmp.ge.s32.totalorder %s1006_s12, 1  ;;  %p254_p8 = scmp.lt.s32.totalorder %s1006_s12, 3 }
   0xf   : > { %p831_p9 = scmp.eq.s32.totalorder %s1085_s13, 0  ;;  %s274_s24 = sshll.u32 %s1197_s5, 4  ;;  %s275_s24 = int_to_ptr.hbm [resolvable:$true] %s274_s24 }
  0x10   : > { %p1113_p10 = pnand %p716_p7, %p254_p8  ;;  %s1008_s25 = smov [#allocation2]  }
  0x11   : > { %s276_s26 = sshll.u32 %s1008_s25, 4  ;;  %s291_s29 = sshll.u32 %s1199_s7, 4  ;;  %s277_s26 = int_to_ptr.vmem [resolvable:$true] %s276_s26  ;;  %s292_s29 = int_to_ptr.hbm [resolvable:$true] %s291_s29 }
  0x12   : > { %p820_p11 = pneg %p1113_p10  ;;  %s1009_s14 = smov 64  }
  0x13   : > { %s1010_s16 = smov 4   ;;  %s1011_s17 = smov [#allocation5]  }
  0x14   : > { %p821_p12 = pnand %p831_p9, %p820_p11  ;;  %s293_s22 = sshll.u32 %s1011_s17, 4  ;;  %s294_s22 = int_to_ptr.vmem [resolvable:$true] %s293_s22 }
  0x15   : > { %326 = sbr.rel (%p1113_p10) target bundleno = 452 (0x1c4), region = 56 }
  0x16   : > { %823 = dma.hbm_to_vmem [thread:$0]  (!%p821_p12), %s275_s24, 1024, %s277_s26, [#allocation3], %s1009_s14, %s1009_s14, %s1010_s16  }
  0x17   : > { %826 = dma.hbm_to_vmem [thread:$0]  (!%p821_p12), %s292_s29, 1024, %s294_s22, [#allocation6], %s1009_s14, %s1009_s14, %s1010_s16  }
  0x1a   : > { %981 = dma.done.wait (%p831_p9), [#allocation3], 1024  }
  0x1b   : > { %983 = vsyncadd (%p831_p9), [#allocation3], 4294966272 }
  0x1c   : > { %985 = dma.done.wait (%p831_p9), [#allocation6], 1024  }
  0x1d   : > { %987 = vsyncadd (%p831_p9), [#allocation6], 4294966272  ;;  %p371_p13 = scmp.lt.s32.totalorder %s1085_s13, 1  ;;  %v1012_v0 = vmov 0   ;;  %s1206_s0 = sld [smem:[#allocation11_spill]]  ;;  %v801_v2 = vld [vmem:[#allocation2 + $0x38] sm:$0xff] }
  0x1e   : > { %874 = vset.pattern.permute.xlu0 %v1012_v0  ;;  %497 = vmatpush.bf16.msra.mxu0 %v801_v2  ;;  %v800_v4 = vld [vmem:[#allocation2 + $0x30] sm:$0xff]  ;;  %v799_v5 = vld [vmem:[#allocation2 + $0x28] sm:$0xff]  ;;  %v798_v6 = vld [vmem:[#allocation2 + $0x20] sm:$0xff]  ;;  %v1013_v11 = vmov 839922192   ;;  %s791_s27 = sshll.u32 %s1085_s13, 3 }
  0x1f   : > { %s372_s23 = scalar_select %p371_p13, %s1085_s13, 1  ;;  %v797_v7 = vld [vmem:[#allocation2 + $0x18] sm:$0xff]  ;;  %v796_v8 = vld [vmem:[#allocation2 + $0x10] sm:$0xff]  ;;  %v795_v9 = vld [vmem:[#allocation2 + $0x8] sm:$0xff]  ;;  %v387_v12 = vunpack.c.l.s4 %v1013_v11  ;;  %vm604_vm0 = vcmask 261120  }
  0x20   : > { %v794_v10 = vld [vmem:[#allocation2] sm:$0xff]  ;;  %v809_v17 = vld [vmem:[#allocation5 + $0x38] sm:$0xff]  ;;  %v808_v22 = vld [vmem:[#allocation5 + $0x30] sm:$0xff]  ;;  %s617_s16 = scalar_lea.hbm %s1201_s9, %s791_s27 }
  0x21   : > { %s724_s21 = sshll.u32 %s372_s23, 2  ;;  %v380_v13 = vld [vmem:[%s1194_s2] sm:$0x1]  ;;  %v388_v14 = vunpack.c.0.s8 %v387_v12  ;;  %591 = vmatpush.bf16.msra.mxu1 %v809_v17  ;;  %v807_v26 = vld [vmem:[#allocation5 + $0x28] sm:$0xff]  ;;  %v805_v37 = vld [vmem:[#allocation5 + $0x18] sm:$0xff]  ;;  %s621_s24 = sshll.u32 %s617_s16, 4  ;;  %s622_s24 = int_to_ptr.hbm [resolvable:$true] %s621_s24 }
  0x22   : > { %s378_s29 = scalar_lea.vmem %s1193_s1, %s724_s21  ;;  %498 = vmatpush.bf16.msra.mxu0 %v800_v4  ;;  %v391_v15 = vpack.i.b16 %v380_v13, %v380_v13  ;;  %v399_v16 = vld [vmem:[%s1195_s3] sm:$0x1]  ;;  %v804_v49 = vld [vmem:[#allocation5 + $0x10] sm:$0xff]  ;;  %v803_v50 = vld [vmem:[#allocation5 + $0x8] sm:$0xff]  ;;  %s950_s25 = sshra.s32 %s622_s24, 4  ;;  %s951_s25 = int_to_ptr.hbm [resolvable:$true] %s950_s25 }
  0x23   : > { %s374_s26 = scalar_lea.vmem %s1206_s0, %s724_s21  ;;  %v398_v3 = vld [vmem:[%s378_s29] sm:$0xf]  ;;  %v410_v21 = vpack.i.b16 %v399_v16, %v399_v16  ;;  %s952_s0 = scalar_lea.hbm %s951_s25, 8 }
  0x24   : > { %v379_v1 = vld [vmem:[%s374_s26] sm:$0xf]  ;;  %v393_v19 = vperm.slane %v391_v15, 0  ;;  %s368_s26 = sand.u32 1, %s998_s10   ;;  %p953_p0 = scmp.ne.s32.totalorder %s951_s25, %s952_s0 }
  0x25   : > { %383 = vperm.xlu0 %874, %v379_v1   ;;  %v412_v25 = vperm.slane %v410_v21, 0  ;;  %592 = vmatpush.bf16.msra.mxu1 %v808_v22  ;;  %v806_v31 = vld [vmem:[#allocation5 + $0x20] sm:$0xff]  ;;  %s723_s28 = sshll.u32 %s368_s26, 3  ;;  %s607_s13 = scalar_lea.sflag [#allocation4], %s368_s26 }
  0x26   : > { %499 = vmatpush.bf16.msra.mxu0 %v799_v5  ;;  %v395_v23 = vunpack.c.l.bf16 %v393_v19  ;;  %v421_v32 = vld [vmem:[%s1196_s4] sm:$0x1]  ;;  %s370_s23 = scalar_lea.vmem [#allocation7], %s723_s28  ;;  %p954_p1 = pnand %p953_p0, %p1102_p5 }
  0x27   : > { %v414_v29 = vunpack.c.l.bf16 %v412_v25  ;;  %v423_v36 = vpack.i.b16 %v421_v32, %v421_v32  ;;  %v802_v51 = vld [vmem:[#allocation5] sm:$0xff]  ;;  %s619_s21 = sshll.u32 %s370_s23, 4  ;;  %s956_s28 = scalar_lea.hbm %s1201_s9, 16  ;;  %s620_s21 = int_to_ptr.vmem [resolvable:$true] %s619_s21 }
  0x28   : > { %v511_v52 = vld [vmem:[%s1198_s6] sm:$0x1]  ;;  %p955_p2 = pneg %p954_p1  ;;  %p957_p3 = scmp.lt.s32.totalorder %s951_s25, %s1201_s9 }
  0x29   : > { %593 = vmatpush.bf16.msra.mxu1 %v807_v26  ;;  %v425_v41 = vperm.slane %v423_v36, 0  ;;  %v513_v53 = vpack.i.b16 %v511_v52, %v511_v52  ;;  %v875_v63 = vld [vmem:[%s1200_s8] ss:$0 sm:$0xff]  ;;  %p958_p4 = scmp.lt.s32.totalorder %s956_s28, %s952_s0 }
  0x2a   : > { %500 = vmatpush.bf16.msra.mxu0 %v798_v6 }
  0x2b   : > { %v427_v44 = vunpack.c.l.bf16 %v425_v41  ;;  %v515_v54 = vperm.slane %v513_v53, 0  ;;  %p959_p7 = por %p958_p4, %p957_p3 }
  0x2d   : > { %402 = vperm.xlu0 %874, %v398_v3   ;;  %594 = vmatpush.bf16.msra.mxu1 %v806_v31  ;;  %v517_v57 = vunpack.c.l.bf16 %v515_v54  ;;  %p960_p8 = pnand %p959_p7, %p955_p2 }
  0x2e   : > { %501 = vmatpush.bf16.msra.mxu0 %v797_v7 }
  0x31   : > { %595 = vmatpush.bf16.msra.mxu1 %v805_v37 }
  0x32   : > { %502 = vmatpush.bf16.msra.mxu0 %v796_v8 }
  0x35   : > { %596 = vmatpush.bf16.msra.mxu1 %v804_v49 }
  0x36   : > { %503 = vmatpush.bf16.msra.mxu0 %v795_v9 }
  0x39   : > { %597 = vmatpush.bf16.msra.mxu1 %v803_v50 }
  0x3a   : > { %504 = vmatpush.bf16.msra.mxu0 %v794_v10 }
  0x3d   : > { %598 = vmatpush.bf16.msra.mxu1 %v802_v51 }
  0x97   : > { %v384_v18 = vpop.permute.xlu0 %383 }
  0x98   : > { %v389_v20 = vperm.slane %v384_v18, %v388_v14 }
  0x9a   : > { %v394_v24 = vunpack.c.l.bf16 %v389_v20 }
  0x9c   : > { %v396_v28 = vmul.f32 %v395_v23, %v394_v24 }
  0x9e   : > { %v397_v34 = vpack.c.bf16 %v396_v28, %v396_v28 }
  0x9f   : > { %v403_v27 = vpop.permute.xlu0 %402 }
  0xa0   : > { %v408_v30 = vperm.slane %v403_v27, %v388_v14  ;;  %v417_v39 = vunpack.c.l.bf16 %v397_v34 }
  0xa2   : > { %v413_v33 = vunpack.c.l.bf16 %v408_v30 }
  0xa4   : > { %v415_v35 = vmul.f32 %v414_v29, %v413_v33 }
  0xa6   : > { %v416_v38 = vpack.c.bf16 %v415_v35, %v415_v35 }
  0xa8   : > { %v418_v40 = vunpack.c.l.bf16 %v416_v38 }
  0xaa   : > { %v419_v42 = vadd.f32 %v418_v40, %v417_v39 }
  0xac   : > { %v420_v43 = vpack.c.bf16 %v419_v42, %v419_v42 }
  0xae   : > { %v426_v45 = vunpack.c.l.bf16 %v420_v43 }
  0xb0   : > { %v428_v46 = vadd.f32 %v427_v44, %v426_v45 }
  0xb2   : > { %v431_v47 = vmax.f32 %v428_v46, 0.0 }
  0xb4   : > { %v432_v48 = vpack.c.bf16 %v431_v47, %v431_v47 }
  0xb6   : > { %505 = vmatmul.bf16.vlgmr.msra.gmra.mxu0 %v432_v48 }
 0x133   : > { %v506_v55 = vpop.f32.mrf.mxu0 }
 0x134   : > { %v510_v56 = vpack.c.bf16 %v506_v55, %v506_v55 }
 0x136   : > { %v516_v58 = vunpack.c.l.bf16 %v510_v56 }
 0x138   : > { %v518_v59 = vadd.f32 %v517_v57, %v516_v58 }
 0x13a   : > { %v521_v60 = vmax.f32 %v518_v59, 0.0 }
 0x13b   : > { %v508_v61 = vpop.f32.mrf.mxu0 }
 0x13c   : > { %v522_v62 = vpack.c.bf16 %v521_v60, %v521_v60 }
 0x13e   : > { %599 = vmatmul.bf16.vlgmr.msra.gmra.mxu1 %v522_v62 }
 0x1bb   : > { %v600_v0 = vpop.f32.mrf.mxu1 }
 0x1bc   : > { %v601_v1 = vadd.f32 %v875_v63, %v600_v0 }
 0x1be   : > { %605 = vst.msk [vmem:[%s370_s23] sm:$0xff] %vm604_vm0, %v601_v1 }
 0x1bf   : > { %963 = shalt.err (!%p960_p8)
}
 0x1c0   : > { %818 = dma.vmem_to_hbm [thread:$0]  (%p1102_p5), %s620_s21, 128, %s622_s24, %s607_s13  }
 0x1c3   : > { %v602_v2 = vpop.f32.mrf.mxu1 }
 0x1c4 PF: > { %p835_p9 = scmp.ge.s32.totalorder %s1006_s12, 2  ;;  %s633_s26 = sand.u32 1, %s994_s30  }
 0x1c5   : > { %s634_s17 = scalar_lea.sflag [#allocation4], %s633_s26 }
 0x1c6   : > { %p828_p10 = pnand %p835_p9, %p1106_p6 }
 0x1c8   : > { %p829_p11 = pneg %p828_p10 }
 0x1ca   : > { %989 = dma.done.wait (%p829_p11), %s634_s17, 128  }
 0x1cb   : > { %991 = vsyncadd (%p829_p11), %s634_s17, 4294967168  ;;  %p21_p12 = scmp.ge.s32.totalorder %s1089_s15, 4   ;;  %s1207_s30 = smov %s998_s10 }
 0x1cc   : > { %s1208_s10 = smov %s1002_s11  ;;  %s1209_s11 = smov %s1100_s18 }
 0x1cd   : > { %s1210_s12 = smov %s1089_s15  ;;  %23 = sbr.rel (!%p21_p12) target bundleno = 7 (0x7), region = 103 }
 0x1d2   :  { %640 = vsyncpa [#allocation3], 1 }
 0x1d3   :  { %642 = vsyncpa [#allocation3 + $0x1], 1 }
 0x1d4   :  { %643 = vsyncpa [#allocation6], 1 }
 0x1d5   :  { %644 = vsyncpa [#allocation4], 1 }
 0x1d6   :  { %646 = vsyncpa [#allocation4 + $0x1], 1 }

</bundles_post_ra>
